<compile_context>
chip_gen: v7x
topology: tpu7x:2x2x1
jax: 0.10.0
libtpu: 0.0.40
codegen_flags: <defaults>
</compile_context>

<pallas_src>
import jax
import jax.numpy as jnp
from jax import lax
from jax.experimental import pallas as pl
from jax.experimental.pallas import tpu as pltpu

SELU_ALPHA = 1.6732632423543772
SELU_SCALE = 1.0507009873554805


def _selu(x):
    # exp(min(x, 0)) so exp never overflows (safe if ever differentiated).
    return SELU_SCALE * jnp.where(
        x > 0, x, SELU_ALPHA * (jnp.exp(jnp.minimum(x, 0.0)) - 1.0))


def median_pooled_fc_kernel(x_ref, w1a_ref, w1b_ref, b1_ref,
                            w2_ref, b2_ref, w3_ref, b3_ref, o_ref):
    bt, n, d = x_ref.shape
    h_dim = w1a_ref.shape[1]
    o_dim = w3_ref.shape[1]
    cd = w1a_ref.dtype                      # MXU compute dtype (bf16 or f32)

    x = x_ref[...]                          # (BT, N, D) f32, loaded once

    # ---- lower median over the sequence axis (matches torch.median) -------
    # rank[b, i, f] = #{ j : x[b,j,f] < x[b,i,f]  or (equal and j < i) }
    # Tie-break by index makes rank a permutation of 0..N-1 per column, so
    # exactly one element has rank k. Accumulated with a fori_loop over j so
    # the live working set stays (BT, N, D) — no (N, N, D) intermediate — and
    # all BT batch elements are ranked in one vectorized pass.
    k = (n - 1) // 2                        # torch.median -> lower median
    i_iota = lax.broadcasted_iota(jnp.int32, (bt, n, d), 1)

    def rank_body(j, rank):
        xj = x_ref[:, pl.ds(j, 1), :]                      # (BT, 1, D)
        smaller = (xj < x) | ((xj == x) & (j < i_iota))    # (BT, N, D)
        return rank + smaller.astype(jnp.int32)

    rank = lax.fori_loop(0, n, rank_body,
                         jnp.zeros((bt, n, d), jnp.int32),
                         unroll=min(8, n))
    sel = (rank == k).astype(x.dtype)
    med = jnp.sum(x * sel, axis=1)                         # (BT, D) f32

    # ---- MLP on the stacked (BT*N, .) slab ---------------------------------
    x2 = x.astype(cd).reshape(bt * n, d)
    hx = jnp.dot(x2, w1a_ref[...], preferred_element_type=jnp.float32)
    # One batched (BT, D) @ (D, H) for the median half of the first linear;
    # the bias is folded in so the broadcast-add over N happens once.
    hm = jnp.dot(med.astype(cd), w1b_ref[...],
                 preferred_element_type=jnp.float32) + b1_ref[...]   # (BT, H)
    h1 = _selu(hx.reshape(bt, n, h_dim) + hm[:, None, :]).reshape(bt * n, h_dim)
    h2 = _selu(jnp.dot(h1.astype(cd), w2_ref[...],
                       preferred_element_type=jnp.float32) + b2_ref[...])
    h3 = jnp.dot(h2.astype(cd), w3_ref[...],
                 preferred_element_type=jnp.float32) + b3_ref[...]
    o_ref[...] = h3.reshape(bt, n, o_dim).astype(o_ref.dtype)   # one block store


def _choose_block_batch(B, N, D, H, O):
    # Target M = BT*N ~ 256 rows per matmul (fills the v6e/v7x 256-wide MXU;
    # a superset of v5e's 128), bounded by a VMEM budget with v7x (64 MiB/TC)
    # headroom, while keeping >= 2 grid steps when the batch allows it so both
    # v7x TensorCores get work.
    bt = min(B, max(1, pl.cdiv(256, N)))
    budget = 24 * 1024 * 1024

    def vmem_bytes(b):
        io = 2 * b * N * (D + O) * 4              # double-buffered x/out blocks
        act = b * N * (2 * D + 3 * H + O) * 4     # activations + rank scratch
        w = 2 * (2 * D * H + H * H + H * O + 2 * H + O) * 4
        return io + act + w

    while bt > 1 and vmem_bytes(bt) > budget:
        bt //= 2
    while bt > 1 and pl.cdiv(B, bt) < 2:
        bt = max(1, bt // 2)
    return bt


def median_pooled_fc(x, params, compute_dtype=jnp.bfloat16):
    """x: (B, N, D); params: (w1 (2D,H), b1 (H,), w2 (H,H), b2 (H,), w3 (H,O), b3 (O,))."""
    B, N, D = x.shape
    w1, b1, w2, b2, w3, b3 = params
    H = w1.shape[1]
    O = w3.shape[1]
    # Split the first weight for the concat-free first linear; cast matmul
    # operands to the MXU compute dtype (f32 accumulation inside the kernel).
    w1a = w1[:D].astype(compute_dtype)
    w1b = w1[D:].astype(compute_dtype)
    w2c = w2.astype(compute_dtype)
    w3c = w3.astype(compute_dtype)

    BT = _choose_block_batch(B, N, D, H, O)
    grid = (pl.cdiv(B, BT),)

    wbytes = jnp.dtype(compute_dtype).itemsize
    cost = pl.CostEstimate(
        flops=2 * B * N * (2 * D * H + H * H + H * O) + 3 * B * N * N * D,
        transcendentals=2 * B * N * H,
        bytes_accessed=4 * B * N * (D + O)
        + wbytes * (2 * D * H + H * H + H * O) + 4 * (2 * H + O),
    )

    # NOTE: the constant-index weight/bias specs would ideally be
    # single-buffered (pl.Buffered(1)); left at the default since it only
    # matters at production-size H.
    def wspec(shape):
        return pl.BlockSpec(shape, lambda b: (0, 0))

    return pl.pallas_call(
        median_pooled_fc_kernel,
        out_shape=jax.ShapeDtypeStruct((B, N, O), x.dtype),
        grid_spec=pltpu.PrefetchScalarGridSpec(
            num_scalar_prefetch=0,
            grid=grid,
            in_specs=[
                pl.BlockSpec((BT, N, D), lambda b: (b, 0, 0)),   # x (f32)
                wspec((D, H)), wspec((D, H)), wspec((1, H)),
                wspec((H, H)), wspec((1, H)),
                wspec((H, O)), wspec((1, O)),
            ],
            out_specs=pl.BlockSpec((BT, N, O), lambda b: (b, 0, 0)),
        ),
        compiler_params=pltpu.CompilerParams(
            dimension_semantics=("parallel",),
            vmem_limit_bytes=48 * 1024 * 1024,
        ),
        cost_estimate=cost,
    )(x,
      w1a, w1b, b1.reshape(1, -1).astype(jnp.float32),
      w2c, b2.reshape(1, -1).astype(jnp.float32),
      w3c, b3.reshape(1, -1).astype(jnp.float32))


def _reference(x, params):
    """Pure-JAX reference matching the PyTorch forward."""
    w1, b1, w2, b2, w3, b3 = params
    N = x.shape[1]
    med = jnp.sort(x, axis=1)[:, (N - 1) // 2, :]          # torch lower median
    h = jnp.concatenate(
        [x, jnp.broadcast_to(med[:, None, :], x.shape)], axis=-1)
    h = _selu(h @ w1 + b1)
    h = _selu(h @ w2 + b2)
    return h @ w3 + b3


if __name__ == "__main__":
    B, N, in_dim, hidden_dim, out_dim = 2, 8, 16, 32, 8   # layers=2 -> 3 linears

    key = jax.random.PRNGKey(0)
    kx, k1, k2, k3, k4, k5, k6 = jax.random.split(key, 7)

    x = jax.random.normal(kx, (B, N, in_dim), dtype=jnp.float32)
    w1 = jax.random.normal(k1, (2 * in_dim, hidden_dim), dtype=jnp.float32) * 0.1
    b1 = jax.random.normal(k2, (hidden_dim,), dtype=jnp.float32) * 0.1
    w2 = jax.random.normal(k3, (hidden_dim, hidden_dim), dtype=jnp.float32) * 0.1
    b2 = jax.random.normal(k4, (hidden_dim,), dtype=jnp.float32) * 0.1
    w3 = jax.random.normal(k5, (hidden_dim, out_dim), dtype=jnp.float32) * 0.1
    b3 = jax.random.normal(k6, (out_dim,), dtype=jnp.float32) * 0.1
    params = (w1, b1, w2, b2, w3, b3)

    ref = jax.block_until_ready(_reference(x, params))

    # Exact-precision path (f32 MXU) — must match the f32 reference tightly.
    out_f32 = jax.block_until_ready(
        median_pooled_fc(x, params, compute_dtype=jnp.float32))
    assert out_f32.shape == (B, N, out_dim), out_f32.shape
    assert jnp.allclose(out_f32, ref, rtol=1e-5, atol=1e-5), (
        f"f32 max abs err {jnp.max(jnp.abs(out_f32 - ref))}")

    # bf16-MXU path (default): bf16 weights/activations into the MXU, f32
    # accumulation and f32 median/SELU/bias math -> looser tolerance vs f32 ref.
    out_bf16 = jax.block_until_ready(median_pooled_fc(x, params))
    assert out_bf16.shape == (B, N, out_dim), out_bf16.shape
    assert jnp.allclose(out_bf16, ref, rtol=5e-2, atol=5e-2), (
        f"bf16 max abs err {jnp.max(jnp.abs(out_bf16 - ref))}")

    print("KERNEL_OK")
</pallas_src>

<mosaic_0001>
module attributes {stable_mosaic.version = 11 : i64} {
  func.func @median_pooled_fc_kernel(%arg0: i32, %arg1: memref<1x8x16xf32, #tpu.memory_space<vmem>>, %arg2: memref<16x32xf32, #tpu.memory_space<vmem>>, %arg3: memref<16x32xf32, #tpu.memory_space<vmem>>, %arg4: memref<1x32xf32, #tpu.memory_space<vmem>>, %arg5: memref<32x32xf32, #tpu.memory_space<vmem>>, %arg6: memref<1x32xf32, #tpu.memory_space<vmem>>, %arg7: memref<32x8xf32, #tpu.memory_space<vmem>>, %arg8: memref<1x8xf32, #tpu.memory_space<vmem>>, %arg9: memref<1x8x8xf32, #tpu.memory_space<vmem>>) attributes {dimension_semantics = [#tpu.dimension_semantics<parallel>], iteration_bounds = array<i64: 2>, scalar_prefetch = 0 : i64, scratch_operands = 0 : i64, tpu.core_type = #tpu.core_type<tc>, window_params = [{transform_indices = @transform_0, window_bounds = array<i64: 1, 8, 16>}, {pipeline_mode = #tpu.pipeline_mode<synchronous>, transform_indices = @transform_1, window_bounds = array<i64: 16, 32>}, {pipeline_mode = #tpu.pipeline_mode<synchronous>, transform_indices = @transform_2, window_bounds = array<i64: 16, 32>}, {pipeline_mode = #tpu.pipeline_mode<synchronous>, transform_indices = @transform_3, window_bounds = array<i64: 1, 32>}, {pipeline_mode = #tpu.pipeline_mode<synchronous>, transform_indices = @transform_4, window_bounds = array<i64: 32, 32>}, {pipeline_mode = #tpu.pipeline_mode<synchronous>, transform_indices = @transform_5, window_bounds = array<i64: 1, 32>}, {pipeline_mode = #tpu.pipeline_mode<synchronous>, transform_indices = @transform_6, window_bounds = array<i64: 32, 8>}, {pipeline_mode = #tpu.pipeline_mode<synchronous>, transform_indices = @transform_7, window_bounds = array<i64: 1, 8>}, {transform_indices = @transform_8, window_bounds = array<i64: 1, 8, 8>}]} {
    %c0 = arith.constant 0 : index
    %c0_0 = arith.constant 0 : index
    %c0_1 = arith.constant 0 : index
    %0 = vector.load %arg1[%c0, %c0_0, %c0_1] : memref<1x8x16xf32, #tpu.memory_space<vmem>>, vector<1x8x16xf32>
    %1 = tpu.iota {dimensions = array<i32: 1>} : vector<1x8x16xi32>
    %c0_i32 = arith.constant 0 : i32
    %2 = vector.broadcast %c0_i32 : i32 to vector<1x8x16xi32>
    %c0_i32_2 = arith.constant 0 : i32
    %c0_3 = arith.constant 0 : index
    %3 = arith.index_cast %c0_i32_2 : i32 to index
    %c0_4 = arith.constant 0 : index
    %4 = vector.load %arg1[%c0_3, %3, %c0_4] : memref<1x8x16xf32, #tpu.memory_space<vmem>>, vector<1x1x16xf32>
    %5 = vector.broadcast %4 : vector<1x1x16xf32> to vector<1x8x16xf32>
    %6 = arith.cmpf olt, %5, %0 : vector<1x8x16xf32>
    %7 = vector.broadcast %4 : vector<1x1x16xf32> to vector<1x8x16xf32>
    %8 = arith.cmpf oeq, %7, %0 : vector<1x8x16xf32>
    %9 = vector.broadcast %c0_i32_2 : i32 to vector<1x8x16xi32>
    %10 = arith.cmpi slt, %9, %1 : vector<1x8x16xi32>
    %11 = arith.andi %8, %10 : vector<1x8x16xi1>
    %12 = arith.ori %6, %11 : vector<1x8x16xi1>
    %13 = arith.extui %12 : vector<1x8x16xi1> to vector<1x8x16xi32>
    %14 = arith.addi %2, %13 : vector<1x8x16xi32>
    %c1_i32 = arith.constant 1 : i32
    %c0_5 = arith.constant 0 : index
    %15 = arith.index_cast %c1_i32 : i32 to index
    %c0_6 = arith.constant 0 : index
    %16 = vector.load %arg1[%c0_5, %15, %c0_6] : memref<1x8x16xf32, #tpu.memory_space<vmem>>, vector<1x1x16xf32>
    %17 = vector.broadcast %16 : vector<1x1x16xf32> to vector<1x8x16xf32>
    %18 = arith.cmpf olt, %17, %0 : vector<1x8x16xf32>
    %19 = vector.broadcast %16 : vector<1x1x16xf32> to vector<1x8x16xf32>
    %20 = arith.cmpf oeq, %19, %0 : vector<1x8x16xf32>
    %21 = vector.broadcast %c1_i32 : i32 to vector<1x8x16xi32>
    %22 = arith.cmpi slt, %21, %1 : vector<1x8x16xi32>
    %23 = arith.andi %20, %22 : vector<1x8x16xi1>
    %24 = arith.ori %18, %23 : vector<1x8x16xi1>
    %25 = arith.extui %24 : vector<1x8x16xi1> to vector<1x8x16xi32>
    %26 = arith.addi %14, %25 : vector<1x8x16xi32>
    %c2_i32 = arith.constant 2 : i32
    %c0_7 = arith.constant 0 : index
    %27 = arith.index_cast %c2_i32 : i32 to index
    %c0_8 = arith.constant 0 : index
    %28 = vector.load %arg1[%c0_7, %27, %c0_8] : memref<1x8x16xf32, #tpu.memory_space<vmem>>, vector<1x1x16xf32>
    %29 = vector.broadcast %28 : vector<1x1x16xf32> to vector<1x8x16xf32>
    %30 = arith.cmpf olt, %29, %0 : vector<1x8x16xf32>
    %31 = vector.broadcast %28 : vector<1x1x16xf32> to vector<1x8x16xf32>
    %32 = arith.cmpf oeq, %31, %0 : vector<1x8x16xf32>
    %33 = vector.broadcast %c2_i32 : i32 to vector<1x8x16xi32>
    %34 = arith.cmpi slt, %33, %1 : vector<1x8x16xi32>
    %35 = arith.andi %32, %34 : vector<1x8x16xi1>
    %36 = arith.ori %30, %35 : vector<1x8x16xi1>
    %37 = arith.extui %36 : vector<1x8x16xi1> to vector<1x8x16xi32>
    %38 = arith.addi %26, %37 : vector<1x8x16xi32>
    %c3_i32 = arith.constant 3 : i32
    %c0_9 = arith.constant 0 : index
    %39 = arith.index_cast %c3_i32 : i32 to index
    %c0_10 = arith.constant 0 : index
    %40 = vector.load %arg1[%c0_9, %39, %c0_10] : memref<1x8x16xf32, #tpu.memory_space<vmem>>, vector<1x1x16xf32>
    %41 = vector.broadcast %40 : vector<1x1x16xf32> to vector<1x8x16xf32>
    %42 = arith.cmpf olt, %41, %0 : vector<1x8x16xf32>
    %43 = vector.broadcast %40 : vector<1x1x16xf32> to vector<1x8x16xf32>
    %44 = arith.cmpf oeq, %43, %0 : vector<1x8x16xf32>
    %45 = vector.broadcast %c3_i32 : i32 to vector<1x8x16xi32>
    %46 = arith.cmpi slt, %45, %1 : vector<1x8x16xi32>
    %47 = arith.andi %44, %46 : vector<1x8x16xi1>
    %48 = arith.ori %42, %47 : vector<1x8x16xi1>
    %49 = arith.extui %48 : vector<1x8x16xi1> to vector<1x8x16xi32>
    %50 = arith.addi %38, %49 : vector<1x8x16xi32>
    %c4_i32 = arith.constant 4 : i32
    %c0_11 = arith.constant 0 : index
    %51 = arith.index_cast %c4_i32 : i32 to index
    %c0_12 = arith.constant 0 : index
    %52 = vector.load %arg1[%c0_11, %51, %c0_12] : memref<1x8x16xf32, #tpu.memory_space<vmem>>, vector<1x1x16xf32>
    %53 = vector.broadcast %52 : vector<1x1x16xf32> to vector<1x8x16xf32>
    %54 = arith.cmpf olt, %53, %0 : vector<1x8x16xf32>
    %55 = vector.broadcast %52 : vector<1x1x16xf32> to vector<1x8x16xf32>
    %56 = arith.cmpf oeq, %55, %0 : vector<1x8x16xf32>
    %57 = vector.broadcast %c4_i32 : i32 to vector<1x8x16xi32>
    %58 = arith.cmpi slt, %57, %1 : vector<1x8x16xi32>
    %59 = arith.andi %56, %58 : vector<1x8x16xi1>
    %60 = arith.ori %54, %59 : vector<1x8x16xi1>
    %61 = arith.extui %60 : vector<1x8x16xi1> to vector<1x8x16xi32>
    %62 = arith.addi %50, %61 : vector<1x8x16xi32>
    %c5_i32 = arith.constant 5 : i32
    %c0_13 = arith.constant 0 : index
    %63 = arith.index_cast %c5_i32 : i32 to index
    %c0_14 = arith.constant 0 : index
    %64 = vector.load %arg1[%c0_13, %63, %c0_14] : memref<1x8x16xf32, #tpu.memory_space<vmem>>, vector<1x1x16xf32>
    %65 = vector.broadcast %64 : vector<1x1x16xf32> to vector<1x8x16xf32>
    %66 = arith.cmpf olt, %65, %0 : vector<1x8x16xf32>
    %67 = vector.broadcast %64 : vector<1x1x16xf32> to vector<1x8x16xf32>
    %68 = arith.cmpf oeq, %67, %0 : vector<1x8x16xf32>
    %69 = vector.broadcast %c5_i32 : i32 to vector<1x8x16xi32>
    %70 = arith.cmpi slt, %69, %1 : vector<1x8x16xi32>
    %71 = arith.andi %68, %70 : vector<1x8x16xi1>
    %72 = arith.ori %66, %71 : vector<1x8x16xi1>
    %73 = arith.extui %72 : vector<1x8x16xi1> to vector<1x8x16xi32>
    %74 = arith.addi %62, %73 : vector<1x8x16xi32>
    %c6_i32 = arith.constant 6 : i32
    %c0_15 = arith.constant 0 : index
    %75 = arith.index_cast %c6_i32 : i32 to index
    %c0_16 = arith.constant 0 : index
    %76 = vector.load %arg1[%c0_15, %75, %c0_16] : memref<1x8x16xf32, #tpu.memory_space<vmem>>, vector<1x1x16xf32>
    %77 = vector.broadcast %76 : vector<1x1x16xf32> to vector<1x8x16xf32>
    %78 = arith.cmpf olt, %77, %0 : vector<1x8x16xf32>
    %79 = vector.broadcast %76 : vector<1x1x16xf32> to vector<1x8x16xf32>
    %80 = arith.cmpf oeq, %79, %0 : vector<1x8x16xf32>
    %81 = vector.broadcast %c6_i32 : i32 to vector<1x8x16xi32>
    %82 = arith.cmpi slt, %81, %1 : vector<1x8x16xi32>
    %83 = arith.andi %80, %82 : vector<1x8x16xi1>
    %84 = arith.ori %78, %83 : vector<1x8x16xi1>
    %85 = arith.extui %84 : vector<1x8x16xi1> to vector<1x8x16xi32>
    %86 = arith.addi %74, %85 : vector<1x8x16xi32>
    %c7_i32 = arith.constant 7 : i32
    %c0_17 = arith.constant 0 : index
    %87 = arith.index_cast %c7_i32 : i32 to index
    %c0_18 = arith.constant 0 : index
    %88 = vector.load %arg1[%c0_17, %87, %c0_18] : memref<1x8x16xf32, #tpu.memory_space<vmem>>, vector<1x1x16xf32>
    %89 = vector.broadcast %88 : vector<1x1x16xf32> to vector<1x8x16xf32>
    %90 = arith.cmpf olt, %89, %0 : vector<1x8x16xf32>
    %91 = vector.broadcast %88 : vector<1x1x16xf32> to vector<1x8x16xf32>
    %92 = arith.cmpf oeq, %91, %0 : vector<1x8x16xf32>
    %93 = vector.broadcast %c7_i32 : i32 to vector<1x8x16xi32>
    %94 = arith.cmpi slt, %93, %1 : vector<1x8x16xi32>
    %95 = arith.andi %92, %94 : vector<1x8x16xi1>
    %96 = arith.ori %90, %95 : vector<1x8x16xi1>
    %97 = arith.extui %96 : vector<1x8x16xi1> to vector<1x8x16xi32>
    %98 = arith.addi %86, %97 : vector<1x8x16xi32>
    %c8_i32 = arith.constant 8 : i32
    %c3_i32_19 = arith.constant 3 : i32
    %99 = vector.broadcast %c3_i32_19 : i32 to vector<1x8x16xi32>
    %100 = arith.cmpi eq, %98, %99 : vector<1x8x16xi32>
    %101 = arith.extui %100 : vector<1x8x16xi1> to vector<1x8x16xi32>
    %102 = arith.sitofp %101 : vector<1x8x16xi32> to vector<1x8x16xf32>
    %103 = arith.mulf %0, %102 : vector<1x8x16xf32>
    %cst = arith.constant dense<0.000000e+00> : vector<1x16xf32>
    %104 = vector.multi_reduction <add>, %103, %cst [1] : vector<1x8x16xf32> to vector<1x16xf32>
    %105 = vector.shape_cast %0 : vector<1x8x16xf32> to vector<8x16xf32>
    %c0_20 = arith.constant 0 : index
    %c0_21 = arith.constant 0 : index
    %106 = vector.load %arg2[%c0_20, %c0_21] : memref<16x32xf32, #tpu.memory_space<vmem>>, vector<16x32xf32>
    %cst_22 = arith.constant dense<0.000000e+00> : vector<8x32xf32>
    %107 = tpu.matmul %105, %106, %cst_22 {dimension_numbers = #tpu.dot_dimension_numbers<[1], [0], [0], [1], [0, 0, 1, 1], [], []>} : vector<8x16xf32>, vector<16x32xf32>, vector<8x32xf32> -> vector<8x32xf32>
    %c0_23 = arith.constant 0 : index
    %c0_24 = arith.constant 0 : index
    %108 = vector.load %arg3[%c0_23, %c0_24] : memref<16x32xf32, #tpu.memory_space<vmem>>, vector<16x32xf32>
    %cst_25 = arith.constant dense<0.000000e+00> : vector<1x32xf32>
    %109 = tpu.matmul %104, %108, %cst_25 {dimension_numbers = #tpu.dot_dimension_numbers<[1], [0], [0], [1], [0, 0, 1, 1], [], []>} : vector<1x16xf32>, vector<16x32xf32>, vector<1x32xf32> -> vector<1x32xf32>
    %c0_26 = arith.constant 0 : index
    %c0_27 = arith.constant 0 : index
    %110 = vector.load %arg4[%c0_26, %c0_27] : memref<1x32xf32, #tpu.memory_space<vmem>>, vector<1x32xf32>
    %111 = arith.addf %109, %110 : vector<1x32xf32>
    %112 = vector.shape_cast %107 : vector<8x32xf32> to vector<1x8x32xf32>
    %113 = vector.shape_cast %111 : vector<1x32xf32> to vector<1x1x32xf32>
    %114 = vector.broadcast %113 : vector<1x1x32xf32> to vector<1x8x32xf32>
    %115 = arith.addf %112, %114 : vector<1x8x32xf32>
    %cst_28 = arith.constant 0.000000e+00 : f32
    %116 = vector.broadcast %cst_28 : f32 to vector<1x8x32xf32>
    %117 = arith.cmpf ogt, %115, %116 : vector<1x8x32xf32>
    %cst_29 = arith.constant 0.000000e+00 : f32
    %118 = vector.broadcast %cst_29 : f32 to vector<1x8x32xf32>
    %119 = arith.minimumf %115, %118 : vector<1x8x32xf32>
    %120 = math.exp %119 : vector<1x8x32xf32>
    %cst_30 = arith.constant 1.000000e+00 : f32
    %121 = vector.broadcast %cst_30 : f32 to vector<1x8x32xf32>
    %122 = arith.subf %120, %121 : vector<1x8x32xf32>
    %cst_31 = arith.constant 1.67326319 : f32
    %123 = vector.broadcast %cst_31 : f32 to vector<1x8x32xf32>
    %124 = arith.mulf %123, %122 : vector<1x8x32xf32>
    %125 = arith.select %117, %115, %124 : vector<1x8x32xi1>, vector<1x8x32xf32>
    %cst_32 = arith.constant 1.05070102 : f32
    %126 = vector.broadcast %cst_32 : f32 to vector<1x8x32xf32>
    %127 = arith.mulf %126, %125 : vector<1x8x32xf32>
    %128 = vector.shape_cast %127 : vector<1x8x32xf32> to vector<8x32xf32>
    %c0_33 = arith.constant 0 : index
    %c0_34 = arith.constant 0 : index
    %129 = vector.load %arg5[%c0_33, %c0_34] : memref<32x32xf32, #tpu.memory_space<vmem>>, vector<32x32xf32>
    %cst_35 = arith.constant dense<0.000000e+00> : vector<8x32xf32>
    %130 = tpu.matmul %128, %129, %cst_35 {dimension_numbers = #tpu.dot_dimension_numbers<[1], [0], [0], [1], [0, 0, 1, 1], [], []>} : vector<8x32xf32>, vector<32x32xf32>, vector<8x32xf32> -> vector<8x32xf32>
    %c0_36 = arith.constant 0 : index
    %c0_37 = arith.constant 0 : index
    %131 = vector.load %arg6[%c0_36, %c0_37] : memref<1x32xf32, #tpu.memory_space<vmem>>, vector<1x32xf32>
    %132 = vector.broadcast %131 : vector<1x32xf32> to vector<8x32xf32>
    %133 = arith.addf %130, %132 : vector<8x32xf32>
    %cst_38 = arith.constant 0.000000e+00 : f32
    %134 = vector.broadcast %cst_38 : f32 to vector<8x32xf32>
    %135 = arith.cmpf ogt, %133, %134 : vector<8x32xf32>
    %cst_39 = arith.constant 0.000000e+00 : f32
    %136 = vector.broadcast %cst_39 : f32 to vector<8x32xf32>
    %137 = arith.minimumf %133, %136 : vector<8x32xf32>
    %138 = math.exp %137 : vector<8x32xf32>
    %cst_40 = arith.constant 1.000000e+00 : f32
    %139 = vector.broadcast %cst_40 : f32 to vector<8x32xf32>
    %140 = arith.subf %138, %139 : vector<8x32xf32>
    %cst_41 = arith.constant 1.67326319 : f32
    %141 = vector.broadcast %cst_41 : f32 to vector<8x32xf32>
    %142 = arith.mulf %141, %140 : vector<8x32xf32>
    %143 = arith.select %135, %133, %142 : vector<8x32xi1>, vector<8x32xf32>
    %cst_42 = arith.constant 1.05070102 : f32
    %144 = vector.broadcast %cst_42 : f32 to vector<8x32xf32>
    %145 = arith.mulf %144, %143 : vector<8x32xf32>
    %c0_43 = arith.constant 0 : index
    %c0_44 = arith.constant 0 : index
    %146 = vector.load %arg7[%c0_43, %c0_44] : memref<32x8xf32, #tpu.memory_space<vmem>>, vector<32x8xf32>
    %cst_45 = arith.constant dense<0.000000e+00> : vector<8x8xf32>
    %147 = tpu.matmul %145, %146, %cst_45 {dimension_numbers = #tpu.dot_dimension_numbers<[1], [0], [0], [1], [0, 0, 1, 1], [], []>} : vector<8x32xf32>, vector<32x8xf32>, vector<8x8xf32> -> vector<8x8xf32>
    %c0_46 = arith.constant 0 : index
    %c0_47 = arith.constant 0 : index
    %148 = vector.load %arg8[%c0_46, %c0_47] : memref<1x8xf32, #tpu.memory_space<vmem>>, vector<1x8xf32>
    %149 = vector.broadcast %148 : vector<1x8xf32> to vector<8x8xf32>
    %150 = arith.addf %147, %149 : vector<8x8xf32>
    %151 = vector.shape_cast %150 : vector<8x8xf32> to vector<1x8x8xf32>
    %c0_48 = arith.constant 0 : index
    %c0_49 = arith.constant 0 : index
    %c0_50 = arith.constant 0 : index
    %152 = vector.load %arg9[%c0_48, %c0_49, %c0_50] : memref<1x8x8xf32, #tpu.memory_space<vmem>>, vector<1x8x8xf32>
    tpu.vector_store %arg9[%c0_48, %c0_49, %c0_50], %151 {strides = array<i32>} : memref<1x8x8xf32, #tpu.memory_space<vmem>>, vector<1x8x8xf32>,
    return
  }
  func.func @transform_0(%arg0: i32) -> (i32, i32, i32) {
    %c0_i32 = arith.constant 0 : i32
    %c0_i32_0 = arith.constant 0 : i32
    %c0_i32_1 = arith.constant 0 : i32
    return %arg0, %c0_i32, %c0_i32_0 : i32, i32, i32
  }
  func.func @transform_1(%arg0: i32) -> (i32, i32) {
    %c0_i32 = arith.constant 0 : i32
    %c0_i32_0 = arith.constant 0 : i32
    %c0_i32_1 = arith.constant 0 : i32
    return %c0_i32, %c0_i32_0 : i32, i32
  }
  func.func @transform_2(%arg0: i32) -> (i32, i32) {
    %c0_i32 = arith.constant 0 : i32
    %c0_i32_0 = arith.constant 0 : i32
    %c0_i32_1 = arith.constant 0 : i32
    return %c0_i32, %c0_i32_0 : i32, i32
  }
  func.func @transform_3(%arg0: i32) -> (i32, i32) {
    %c0_i32 = arith.constant 0 : i32
    %c0_i32_0 = arith.constant 0 : i32
    %c0_i32_1 = arith.constant 0 : i32
    return %c0_i32, %c0_i32_0 : i32, i32
  }
  func.func @transform_4(%arg0: i32) -> (i32, i32) {
    %c0_i32 = arith.constant 0 : i32
    %c0_i32_0 = arith.constant 0 : i32
    %c0_i32_1 = arith.constant 0 : i32
    return %c0_i32, %c0_i32_0 : i32, i32
  }
  func.func @transform_5(%arg0: i32) -> (i32, i32) {
    %c0_i32 = arith.constant 0 : i32
    %c0_i32_0 = arith.constant 0 : i32
    %c0_i32_1 = arith.constant 0 : i32
    return %c0_i32, %c0_i32_0 : i32, i32
  }
  func.func @transform_6(%arg0: i32) -> (i32, i32) {
    %c0_i32 = arith.constant 0 : i32
    %c0_i32_0 = arith.constant 0 : i32
    %c0_i32_1 = arith.constant 0 : i32
    return %c0_i32, %c0_i32_0 : i32, i32
  }
  func.func @transform_7(%arg0: i32) -> (i32, i32) {
    %c0_i32 = arith.constant 0 : i32
    %c0_i32_0 = arith.constant 0 : i32
    %c0_i32_1 = arith.constant 0 : i32
    return %c0_i32, %c0_i32_0 : i32, i32
  }
  func.func @transform_8(%arg0: i32) -> (i32, i32, i32) {
    %c0_i32 = arith.constant 0 : i32
    %c0_i32_0 = arith.constant 0 : i32
    %c0_i32_1 = arith.constant 0 : i32
    return %arg0, %c0_i32, %c0_i32_0 : i32, i32, i32
  }
}

</mosaic_0001>

<bundles_post_ra>
// kernel: tpu_custom_call.1
= control target key start
LH: loop header
LB: loop body
LE: loop exit
PB: predicated region body
PF: predicated region fallthrough
CT: control target
= control target key end

     0   :  { %13 = vsyncpa [#allocation3], 0  ;;  %s1497_s0 = inlined_call_operand.vmem [shape: f32[2,8,16], index: 0, kind: input, shape index: {}]   ;;  %s1498_s1 = inlined_call_operand.hbm [shape: f32[16,32], index: 1, kind: input, shape index: {}]   ;;  %s1499_s2 = inlined_call_operand.hbm [shape: f32[16,32], index: 2, kind: input, shape index: {}]   ;;  %s1500_s3 = inlined_call_operand.vmem [shape: f32[1,32], index: 3, kind: input, shape index: {}]   ;;  %s1501_s4 = inlined_call_operand.vmem [shape: f32[32,32], index: 4, kind: input, shape index: {}]   ;;  %s1502_s5 = inlined_call_operand.vmem [shape: f32[1,32], index: 5, kind: input, shape index: {}]   ;;  %s1503_s6 = inlined_call_operand.vmem [shape: f32[32,8], index: 6, kind: input, shape index: {}]   ;;  %s1504_s7 = inlined_call_operand.vmem [shape: f32[1,8], index: 7, kind: input, shape index: {}]   ;;  %s1505_s8 = inlined_call_operand.hbm [shape: f32[2,8,8], index: 8, kind: output, shape index: {}]  }
   0x1   :  { %14 = vsyncpa [#allocation6], 0 }
   0x2   :  { %15 = vsyncpa [#allocation4], 0 }
   0x3   :  { %17 = vsyncpa [#allocation4 + $0x1], 0  ;;  %s1232_s27 = smov 0   ;;  %s1234_s28 = smov 0  }
   0x4   :  { %s1236_s29 = smov 0   ;;  %s1238_s30 = smov 0  }
   0x5 LB: > { %1511 = sst [smem:[#allocation11_spill]] %s1172_s29  ;;  %s1253_s9 = sadd.s32 4294967295, %s1176_s30   ;;  %s1176_s30 = sphi %s1238_s30, %s1529_s30   ;;  %s1172_s29 = sphi %s1236_s29, %s1526_s29   ;;  %s1168_s28 = sphi %s1234_s28, %s1528_s28   ;;  %s1164_s27 = sphi %s1232_s27, %s1527_s27  }
   0x6   : > { %s879_s10 = sadd.s32 4294967294, %s1176_s30   ;;  %s1257_s11 = sadd.s32 1, %s1176_s30  }
   0x7   : > { %s203_s12 = sadd.s32 1, %s1172_s29  ;;  %s200_s13 = ssub.s32 %s1176_s30, %s1257_s11 }
   0x8   : > { %p213_p0 = scmp.ne.s32.totalorder %s1172_s29, %s1168_s28  ;;  %p201_p1 = scmp.eq.s32.totalorder %s200_s13, 0 }
   0x9   : > { %p214_p2 = scmp.eq.s32.totalorder %s1253_s9, 1  ;;  %p219_p3 = scmp.ne.s32.totalorder %s1168_s28, %s1164_s27 }
   0xa   : > { %p220_p4 = scmp.eq.s32.totalorder %s879_s10, 1  ;;  %p880_p7 = scmp.ge.s32.totalorder %s1176_s30, 1 }
   0xb   : > { %s1268_s14 = scalar_select %p201_p1, %s1172_s29, %s203_s12  }
   0xc   : > { %p1270_p5 = por %p214_p2, %p213_p0  ;;  %p1274_p6 = por %p220_p4, %p219_p3 }
   0xd   : > { %1512 = sst [smem:[#allocation12_spill]] %s1268_s14  ;;  %p227_p8 = scmp.lt.s32.totalorder %s1176_s30, 3 }
   0xe   : > { %s1513_s15 = scalar_select %p1270_p5, 1, 0 }
   0xf   : > { %s1514_s16 = scalar_select %p1274_p6, 1, 0 }
  0x10   : > { %p1506_p9 = scmp.eq.s32.totalorder %s1253_s9, 0  ;;  %p1281_p10 = pnand %p880_p7, %p227_p8 }
  0x11   : > { %s1178_s18 = smov [#allocation2]   ;;  %s1179_s21 = smov [#allocation5]  }
  0x12   : > { %s1515_s17 = scalar_select %p1281_p10, 1, 0 }
  0x13   : > { %s239_s19 = sshll.u32 %s1178_s18, 4  ;;  %p990_p11 = pneg %p1281_p10  ;;  %s240_s19 = int_to_ptr.vmem [resolvable:$true] %s239_s19 }
  0x14   : > { %s252_s22 = sshll.u32 %s1179_s21, 4  ;;  %s1050_s25 = scalar_lea.hbm %s1498_s1, 256  ;;  %s1293_s22 = int_to_ptr.vmem [resolvable:$true] %s252_s22 }
  0x15   : > { %p1289_p12 = pnand %p1506_p9, %p990_p11  ;;  %p1051_p13 = scmp.ne.s32.totalorder %s1498_s1, %s1050_s25 }
  0x16   : > { %p1057_p3 = scmp.lt.u32.totalorder %s1050_s25, %s1498_s1 }
  0x17   : > { %p1052_p0 = pneg %p1289_p12 }
  0x19   : > { %p1053_p1 = pnand %p1052_p0, %p1051_p13 }
  0x1b   : > { %p1054_p2 = pneg %p1053_p1 }
  0x1d   : > { %p1059_p4 = pnand %p1057_p3, %p1054_p2 }
  0x1f   : > { %1062 = shalt.err (!%p1059_p4)
}
  0x20   : > { %s1063_s18 = scalar_lea.vmem %s240_s19, 256  ;;  %p1071_p9 = scmp.lt.s32.totalorder %s240_s19, %s240_s19 }
  0x21   : > { %p1064_p7 = scmp.ne.s32.totalorder %s240_s19, %s1063_s18  ;;  %p1072_p6 = scmp.lt.s32.totalorder %s1063_s18, %s1063_s18 }
  0x23   : > { %p1066_p8 = pnand %p1064_p7, %p1052_p0  ;;  %p1073_p5 = por %p1072_p6, %p1071_p9 }
  0x25   : > { %p1067_p11 = pneg %p1066_p8 }
  0x27   : > { %p1074_p10 = pnand %p1073_p5, %p1067_p11 }
  0x29   : > { %1077 = shalt.err (!%p1074_p10)
}
  0x2a   : > { %s1180_s21 = smov 128   ;;  %s1181_s23 = smov 8  }
  0x2b   : > { %993 = dma.hbm_to_vmem [thread:$0]  (!%p1289_p12), %s1498_s1, 256, %s240_s19, [#allocation3], %s1180_s21, %s1180_s21, %s1181_s23  }
  0x2c   : > { %s1078_s12 = scalar_lea.hbm %s1499_s2, 256 }
  0x2d   : > { %p1079_p13 = scmp.ne.s32.totalorder %s1499_s2, %s1078_s12  ;;  %p1085_p9 = scmp.lt.u32.totalorder %s1078_s12, %s1499_s2 }
  0x2f   : > { %p1081_p5 = pnand %p1079_p13, %p1052_p0 }
  0x31   : > { %p1082_p6 = pneg %p1081_p5 }
  0x33   : > { %p1087_p10 = pnand %p1085_p9, %p1082_p6 }
  0x35   : > { %1090 = shalt.err (!%p1087_p10)
}
  0x36   : > { %s1091_s19 = scalar_lea.vmem %s1293_s22, 256  ;;  %p1099_p4 = scmp.lt.s32.totalorder %s1293_s22, %s1293_s22 }
  0x37   : > { %p1092_p1 = scmp.ne.s32.totalorder %s1293_s22, %s1091_s19  ;;  %p1100_p7 = scmp.lt.s32.totalorder %s1091_s19, %s1091_s19 }
  0x39   : > { %p1094_p2 = pnand %p1092_p1, %p1052_p0  ;;  %p1101_p8 = por %p1100_p7, %p1099_p4 }
  0x3b   : > { %p1095_p3 = pneg %p1094_p2 }
  0x3d   : > { %p1102_p11 = pnand %p1101_p8, %p1095_p3 }
  0x3f   : > { %1105 = shalt.err (!%p1102_p11)
}
  0x40   : > { %996 = dma.hbm_to_vmem [thread:$0]  (!%p1289_p12), %s1499_s2, 256, %s1293_s22, [#allocation6], %s1180_s21, %s1180_s21, %s1181_s23  }
  0x41   : > { %p1517_p13 = scmp.ne.s32.totalorder %s1515_s17, 0 }
  0x42   : > { %p1518_p5 = scmp.eq.s32.totalorder (!%p1517_p13), %s1253_s9, 0 }
  0x43   : > { %290 = sbr.rel (%p1517_p13) target bundleno = 828 (0x33c), region = 52 }
  0x4a   : > { %1151 = dma.done.wait (%p1518_p5), [#allocation3], 256   ;;  %p1519_p0 = pmov %p1518_p5 }
  0x4c   : > { %1153 = vsyncadd (%p1519_p0), [#allocation3], 4294967040  ;;  %p1520_p6 = pmov %p1519_p0 }
  0x4d   : > { %p1521_p9 = pmov %p1519_p0 }
  0x4e   : > { %1155 = dma.done.wait (%p1520_p6), [#allocation6], 256  }
  0x4f   : > { %1157 = vsyncadd (%p1521_p9), [#allocation6], 4294967040  ;;  %p327_p10 = scmp.lt.s32.totalorder %s1253_s9, 1  ;;  %v332_v0 = vlaneseq  ;;  %v1182_v1 = vmov 0.0|0.0   ;;  %vm1510_vm0 = vmmov 0   ;;  %v1184_v2 = vmov 0.0  }
  0x50   : > { %965 = vmatprep.subr.bf16.mxu1 %v1182_v1  ;;  %962 = vmatprep.subr.bf16.mxu0 %v1182_v1  ;;  %v516_v4 = vld [vmem:[#allocation5] sm:$0xff]  ;;  %v517_v5 = vld [vmem:[#allocation5 + $0x8] sm:$0xff]  ;;  %v441_v6 = vld [vmem:[#allocation2] sm:$0xff]  ;;  %v1185_v15 = vmov 0   ;;  %s324_s13 = sand.u32 1, %s1168_s28   ;;  %s907_s14 = sshll.u32 %s1253_s9, 7 }
  0x51   : > { %937 = vmatprep.mubr.msk.f32.mxu1 %vm1510_vm0, %v1184_v2  ;;  %s328_s17 = scalar_select %p327_p10, %s1253_s9, 1  ;;  %930 = vmatprep.mubr.msk.f32.mxu0 %vm1510_vm0, %v1184_v2  ;;  %v1360_v3 = vshrl.u32 %v332_v0, 7  ;;  %v966_v7 = vpack.c.bf16 %v517_v5, %v516_v4  ;;  %v442_v8 = vld [vmem:[#allocation2 + $0x8] sm:$0xff]  ;;  %v605_v44 = vld [vmem:[%s1501_s4] sm:$0xff]  ;;  %v607_v47 = vld [vmem:[%s1501_s4 + $0x10] sm:$0xff] }
  0x52   : > { %v963_v11 = vpack.c.bf16 %v442_v8, %v441_v6  ;;  %v606_v45 = vld [vmem:[%s1501_s4 + $0x8] sm:$0xff]  ;;  %v608_v48 = vld [vmem:[%s1501_s4 + $0x18] sm:$0xff]  ;;  %v518_v52 = vld [vmem:[%s1500_s3] sm:$0x1]  ;;  %s887_s18 = sshll.u32 %s324_s13, 3  ;;  %s785_s24 = scalar_lea.sflag [#allocation4], %s324_s13 }
  0x53   : > { %s888_s20 = sshll.u32 %s328_s17, 3  ;;  %vm341_vm1 = vcmp.gt.s32.totalorder %v1360_v3, 0  ;;  %vm352_vm4 = vcmp.gt.s32.totalorder %v1360_v3, 1  ;;  %967 = vmatpush3.bf16.msra.mxu1 %v966_v7  ;;  %vm364_vm10 = vcmp.gt.s32.totalorder %v1360_v3, 2  ;;  %vm376_vm15 = vcmp.gt.s32.totalorder %v1360_v3, 3  ;;  %v699_v4 = vld [vmem:[%s1503_s6 + $0x8] sm:$0xff] }
  0x54   : > { %s1365_s23 = scalar_lea.vmem %s1497_s0, %s888_s20  ;;  %964 = vmatpush3.bf16.msra.mxu0 %v963_v11  ;;  %974 = vmatprep.subr.bf16.mxu1 %v1182_v1  ;;  %v969_v46 = vpack.c.bf16 %v606_v45, %v605_v44  ;;  %v972_v49 = vpack.c.bf16 %v608_v48, %v607_v47  ;;  %v594_v53 = vsub.s32 0, %v1360_v3  ;;  %v700_v6 = vld [vmem:[%s1503_s6 + $0x10] sm:$0xff]  ;;  %v701_v7 = vld [vmem:[%s1503_s6 + $0x18] sm:$0xff]  ;;  %s326_s17 = scalar_lea.vmem [#allocation7], %s887_s18 }
  0x55   : > { %v1369_v9 = vld [vmem:[%s1365_s23] sm:$0xff]  ;;  %968 = vmatprep.subr.bf16.mxu0 %v1182_v1  ;;  %v978_v8 = vpack.c.bf16 %v701_v7, %v700_v6  ;;  %s798_s20 = sshll.u32 %s326_s17, 4  ;;  %p1523_p1 = scmp.ne.s32.totalorder %s1513_s15, 0  ;;  %s1457_s20 = int_to_ptr.vmem [resolvable:$true] %s798_s20 }
  0x56   : > { %v889_v10 = vld [vmem:[%s1365_s23] ss:$0 sm:$0xff]  ;;  %v890_v12 = vld [vmem:[%s1365_s23 + $0x1] ss:$0 sm:$0xff]  ;;  %v891_v13 = vld [vmem:[%s1365_s23 + $0x2] ss:$0 sm:$0xff] }
  0x57   : > { %vm339_vm2 = vcmp.lt.f32.partialorder %v889_v10, %v1369_v9  ;;  %vm340_vm3 = vcmp.eq.f32.partialorder %v889_v10, %v1369_v9  ;;  %vm350_vm6 = vcmp.lt.f32.partialorder %v890_v12, %v1369_v9  ;;  %vm351_vm7 = vcmp.eq.f32.partialorder %v890_v12, %v1369_v9  ;;  %v892_v14 = vld [vmem:[%s1365_s23 + $0x3] ss:$0 sm:$0xff]  ;;  %v893_v17 = vld [vmem:[%s1365_s23 + $0x4] ss:$0 sm:$0xff]  ;;  %v894_v19 = vld [vmem:[%s1365_s23 + $0x5] ss:$0 sm:$0xff] }
  0x58   : > { %vm342_vm5 = vmand %vm340_vm3, %vm341_vm1  ;;  %vm363_vm9 = vcmp.eq.f32.partialorder %v891_v13, %v1369_v9  ;;  %vm362_vm12 = vcmp.lt.f32.partialorder %v891_v13, %v1369_v9  ;;  %vm375_vm14 = vcmp.eq.f32.partialorder %v892_v14, %v1369_v9  ;;  %vm433_vm1 = vcmask 130048   ;;  %v895_v22 = vld [vmem:[%s1365_s23 + $0x6] ss:$0 sm:$0xff]  ;;  %v896_v25 = vld [vmem:[%s1365_s23 + $0x7] ss:$0 sm:$0xff]  ;;  %s1455_s23 = scalar_lea.hbm %s1505_s8, %s907_s14  ;;  %s1106_s25 = scalar_lea.vmem %s1457_s20, 128 }
  0x59   : > { %vm343_vm8 = vmor %vm339_vm2, %vm342_vm5  ;;  %vm374_vm3 = vcmp.lt.f32.partialorder %v892_v14, %v1369_v9  ;;  %931 = vmatmul.mubr.msk.f32.vlgmr.msra.gmra.mrb[0].mxu0 %vm433_vm1, %v1369_v9  ;;  %vm387_vm5 = vcmp.eq.f32.partialorder %v893_v17, %v1369_v9  ;;  %p1107_p12 = scmp.ne.s32.totalorder %s1457_s20, %s1106_s25  ;;  %s1186_s9 = smov [#allocation7]  }
  0x5a   : > { %v344_v16 = vsel %vm343_vm8, 1, %v1185_v15  ;;  %vm353_vm11 = vmand %vm351_vm7, %vm352_vm4  ;;  %948 = vmatprep.mubr.msk.f32.mxu0 %vm1510_vm0, %v1184_v2  ;;  %vm386_vm8 = vcmp.lt.f32.partialorder %v893_v17, %v1369_v9  ;;  %vm411_vm0 = vcmp.eq.f32.partialorder %v895_v22, %v1369_v9  ;;  %970 = vmatpush3.bf16.msra.mxu0 %v969_v46  ;;  %s1110_s26 = sshll.u32 %s1186_s9, 4  ;;  %s1111_s26 = int_to_ptr.vmem [resolvable:$false] %s1110_s26 }
  0x5b   : > { %vm354_vm13 = vmor %vm350_vm6, %vm353_vm11  ;;  %vm388_vm6 = vcmp.gt.s32.totalorder %v1360_v3, 4  ;;  %vm400_vm11 = vcmp.gt.s32.totalorder %v1360_v3, 5  ;;  %971 = vmatprep.subr.bf16.mxu0 %v1182_v1  ;;  %p1108_p2 = pnand %p1107_p12, %p1523_p1  ;;  %s1112_s10 = scalar_lea.vmem %s1111_s26, 256 }
  0x5c   : > { %v355_v18 = vsel %vm354_vm13, 1, %v1185_v15  ;;  %vm365_vm2 = vmand %vm363_vm9, %vm364_vm10  ;;  %vm399_vm10 = vcmp.eq.f32.partialorder %v894_v19, %v1369_v9  ;;  %vm398_vm13 = vcmp.lt.f32.partialorder %v894_v19, %v1369_v9  ;;  %v904_v19 = vld [vmem:[%s1504_s7] ss:$0 sm:$0xff]  ;;  %p1113_p4 = scmp.lt.s32.totalorder %s1457_s20, %s1111_s26  ;;  %p1114_p7 = scmp.lt.s32.totalorder %s1112_s10, %s1106_s25 }
  0x5d   : > { %v356_v20 = vadd.s32 %v355_v18, %v344_v16  ;;  %vm366_vm4 = vmor %vm362_vm12, %vm365_vm2  ;;  %p1109_p3 = pneg %p1108_p2 }
  0x5e   : > { %v367_v21 = vsel %vm366_vm4, 1, %v1185_v15  ;;  %vm377_vm7 = vmand %vm375_vm14, %vm376_vm15  ;;  %vm412_vm14 = vcmp.gt.s32.totalorder %v1360_v3, 6  ;;  %vm410_vm4 = vcmp.lt.f32.partialorder %v895_v22, %v1369_v9  ;;  %973 = vmatpush3.bf16.msra.mxu0 %v972_v49  ;;  %v698_v3 = vld [vmem:[%s1503_s6] sm:$0xff]  ;;  %p1115_p8 = por %p1114_p7, %p1113_p4 }
  0x5f   : > { %v368_v23 = vadd.s32 %v367_v21, %v356_v20  ;;  %vm378_vm9 = vmor %vm374_vm3, %vm377_vm7  ;;  %vm422_vm7 = vcmp.lt.f32.partialorder %v896_v25, %v1369_v9  ;;  %v975_v5 = vpack.c.bf16 %v699_v4, %v698_v3 }
  0x60   : > { %v379_v24 = vsel %vm378_vm9, 1, %v1185_v15  ;;  %vm389_vm12 = vmand %vm387_vm5, %vm388_vm6  ;;  %v427_v32 = vsel %vm422_vm7, 1, %v1185_v15  ;;  %p1116_p11 = pnand %p1115_p8, %p1109_p3 }
  0x61   : > { %v380_v26 = vadd.s32 %v379_v24, %v368_v23  ;;  %vm390_vm2 = vmor %vm386_vm8, %vm389_vm12  ;;  %vm616_vm8 = vcmask 261120  }
  0x62   : > { %v391_v27 = vsel %vm390_vm2, 1, %v1185_v15  ;;  %vm401_vm15 = vmand %vm399_vm10, %vm400_vm11  ;;  %vm782_vm11 = vcmask 64512  }
  0x63   : > { %v392_v28 = vadd.s32 %v391_v27, %v380_v26  ;;  %vm402_vm3 = vmor %vm398_vm13, %vm401_vm15 }
  0x64   : > { %v403_v29 = vsel %vm402_vm3, 1, %v1185_v15  ;;  %vm413_vm9 = vmand %vm411_vm0, %vm412_vm14  ;;  %vm1522_vm0 = vmmov 0  }
  0x65   : > { %v404_v30 = vadd.s32 %v403_v29, %v392_v28  ;;  %vm414_vm5 = vmor %vm410_vm4, %vm413_vm9 }
  0x66   : > { %v415_v31 = vsel %vm414_vm5, 1, %v1185_v15 }
  0x67   : > { %v416_v33 = vadd.s32 %v415_v31, %v404_v30 }
  0x69   : > { %v428_v34 = vadd.s32 %v427_v32, %v416_v33 }
  0x6b   : > { %vm429_vm6 = vcmp.eq.s32.totalorder %v428_v34, 3 }
  0x6c   : > { %v897_v35 = vsel %vm429_vm6, 1.0, %v1184_v2 }
  0x6d   : > { %v432_v36 = vmul.f32 %v897_v35, %v1369_v9  ;;  %v901_v9 = vld [vmem:[%s1502_s5] ss:$0 sm:$0xff] }
  0x6f   : > { %v434_v37 = vsel %vm433_vm1, %v432_v36, 0.0 }
  0x70   : > { %v435_v38 = vrot.slane %v434_v37, 4 }
  0x72   : > { %v436_v39 = vadd.f32 %v435_v38, %v434_v37 }
  0x74   : > { %v437_v40 = vrot.slane %v436_v39, 2 }
  0x76   : > { %v438_v41 = vadd.f32 %v437_v40, %v436_v39 }
  0x78   : > { %v439_v42 = vrot.slane %v438_v41, 1 }
  0x7a   : > { %v440_v43 = vadd.f32 %v439_v42, %v438_v41 }
  0x7c   : > { %938 = vmatmul.mubr.msk.f32.vlgmr.msra.gmra.mrb[0].mxu1 %vm433_vm1, %v440_v43 }
  0x7d   : > { %959 = vmatprep.mubr.msk.f32.mxu1 %vm1522_vm0, %v1184_v2  ;;  %976 = vmatpush3.bf16.msra.mxu1 %v975_v5 }
  0x7e   : > { %977 = vmatprep.subr.bf16.mxu1 %v1182_v1 }
  0x81   : > { %979 = vmatpush3.bf16.msra.mxu1 %v978_v8 }
 0x12c   : > { %v512_v50 = vpop.f32.mrb[0].mxu0 }
 0x12d   : > { %v932_v51 = vpop.f32.mrb[1].mxu0 }
 0x14f   : > { %v588_v54 = vpop.f32.mrb[0].mxu1 }
 0x150   : > { %v589_v55 = vadd.f32 %v588_v54, %v518_v52  ;;  %v939_v56 = vpop.f32.mrb[1].mxu1 }
 0x152   : > { %v595_v57 = vrot.slane %v589_v55, %v594_v53 }
 0x154   : > { %v596_v58 = vadd.f32 %v595_v57, %v512_v50 }
 0x156   : > { %v598_v59 = vmin.f32 %v596_v58, 0.0  ;;  %vm597_vm1 = vcmp.gt.f32.partialorder %v596_v58, 0.0 }
 0x158   : > { %v599_v60 = vmul.f32 1.442695, %v598_v59 }
 0x15a   : > { %1046 = vpow2.f32 %v599_v60 }
 0x164   : > { %v1047_v61 = vpop.eup %1046 }
 0x165   : > { %v900_v62 = vadd.f32 -1.0, %v1047_v61 }
 0x167   : > { %v602_v63 = vmul.f32 1.6732632, %v900_v62 }
 0x169   : > { %v603_v0 = vsel %vm597_vm1, %v596_v58, %v602_v63 }
 0x16a   : > { %v604_v2 = vmul.f32 1.050701, %v603_v0 }
 0x16c   : > { %949 = vmatmul.mubr.msk.f32.vlgmr.msra.gmra.mrb[2].mxu0 %vm616_vm8, %v604_v2 }
 0x23f   : > { %v686_v10 = vpop.f32.mrb[2].mxu0 }
 0x240   : > { %v687_v11 = vadd.f32 %v901_v9, %v686_v10  ;;  %v950_v12 = vpop.f32.mrb[3].mxu0 }
 0x242   : > { %v691_v1 = vmin.f32 %v687_v11, 0.0  ;;  %vm690_vm10 = vcmp.gt.f32.partialorder %v687_v11, 0.0 }
 0x244   : > { %v692_v13 = vmul.f32 1.442695, %v691_v1 }
 0x246   : > { %1048 = vpow2.f32 %v692_v13 }
 0x250   : > { %v1049_v14 = vpop.eup %1048 }
 0x251   : > { %v903_v15 = vadd.f32 -1.0, %v1049_v14 }
 0x253   : > { %v695_v16 = vmul.f32 1.6732632, %v903_v15 }
 0x255   : > { %v696_v17 = vsel %vm690_vm10, %v687_v11, %v695_v16 }
 0x256   : > { %v697_v18 = vmul.f32 1.050701, %v696_v17 }
 0x258   : > { %960 = vmatmul.mubr.msk.f32.vlgmr.msra.gmra.mrb[2].mxu1 %vm616_vm8, %v697_v18 }
 0x32b   : > { %v778_v20 = vpop.f32.mrb[2].mxu1 }
 0x32c   : > { %v779_v21 = vadd.f32 %v904_v19, %v778_v20  ;;  %v961_v22 = vpop.f32.mrb[3].mxu1 }
 0x32e   : > { %783 = vst.msk [vmem:[%s326_s17] sm:$0xff] %vm782_vm11, %v779_v21 }
 0x32f   : > { %1119 = shalt.err (!%p1116_p11)
}
 0x330   : > { %s1120_s12 = scalar_lea.hbm %s1455_s23, 128  ;;  %s1124_s19 = scalar_lea.hbm %s1505_s8, 256 }
 0x331   : > { %p1121_p13 = scmp.ne.s32.totalorder %s1455_s23, %s1120_s12  ;;  %p1125_p6 = scmp.lt.u32.totalorder %s1455_s23, %s1505_s8 }
 0x332   : > { %p1126_p9 = scmp.lt.u32.totalorder %s1124_s19, %s1120_s12  ;;  %p1128_p12 = scmp.lt.u32.totalorder %s1120_s12, %s1455_s23 }
 0x333   : > { %p1122_p5 = pnand %p1121_p13, %p1523_p1 }
 0x334   : > { %p1127_p10 = por %p1126_p9, %p1125_p6 }
 0x335   : > { %p1123_p0 = pneg %p1122_p5 }
 0x336   : > { %p1129_p2 = por %p1128_p12, %p1127_p10 }
 0x338   : > { %p1130_p3 = pnand %p1129_p2, %p1123_p0 }
 0x33a   : > { %1133 = shalt.err (!%p1130_p3)
}
 0x33b   : > { %988 = dma.vmem_to_hbm [thread:$0]  (%p1523_p1), %s1457_s20, 128, %s1455_s23, %s785_s24  }
 0x33c PF: > { %p1005_p4 = scmp.ge.s32.totalorder %s1176_s30, 2  ;;  %s810_s17 = sand.u32 1, %s1164_s27  }
 0x33d   : > { %p1524_p7 = scmp.ne.s32.totalorder %s1514_s16, 0  ;;  %s811_s22 = scalar_lea.sflag [#allocation4], %s810_s17 }
 0x33f   : > { %p998_p8 = pnand %p1005_p4, %p1524_p7 }
 0x341   : > { %1159 = dma.done.wait (!%p998_p8), %s811_s22, 128  }
 0x342   : > { %1161 = vsyncadd (!%p998_p8), %s811_s22, 4294967168  ;;  %s1525_s21 = sld [smem:[#allocation11_spill]]  ;;  %s1526_s29 = sld [smem:[#allocation12_spill]] }
 0x343   : > { %p20_p11 = scmp.ge.s32.totalorder %s1257_s11, 4   ;;  %s1527_s27 = smov %s1168_s28 }
 0x344   : > { %s1529_s30 = smov %s1257_s11 }
 0x345   :  { %22 = sbr.rel (!%p20_p11) target bundleno = 5 (0x5), region = 96 }
 0x348   : > { %s1528_s28 = smov %s1525_s21 }
 0x34c   :  { %816 = vsyncpa [#allocation3], 1 }
 0x34d   :  { %818 = vsyncpa [#allocation3 + $0x1], 1 }
 0x34e   :  { %819 = vsyncpa [#allocation6], 1 }
 0x34f   :  { %820 = vsyncpa [#allocation4], 1 }
 0x350   :  { %822 = vsyncpa [#allocation4 + $0x1], 1 }

</bundles_post_ra>
